<compile_context>
chip_gen: v7x
topology: tpu7x:2x2x1
jax: 0.10.0
libtpu: 0.0.40
codegen_flags: <defaults>
</compile_context>

<pallas_src>
import jax
import jax.numpy as jnp
from jax.experimental import pallas as pl
from jax.experimental.pallas import tpu as pltpu


# ---------------------------------------------------------------------------
# Kernel: one grid step == (batch tile i, layer l)
# ---------------------------------------------------------------------------
def _block_stack_kernel(x_ref,
                        wn1_ref, bn1_ref,     # norm1  : (1, D, D) bf16, (1, 1, D) f32
                        wa_ref, ba_ref,       # attn   : (1, N, N) bf16, (1, N, 1) f32
                        wg1_ref,              # gamma_1: (1, D, D) bf16
                        wn2_ref, bn2_ref,     # norm2  : (1, D, D) bf16, (1, 1, D) f32
                        wm1_ref, bm1_ref,     # mlp.fc1: (1, D, H) bf16, (1, 1, H) f32
                        wm2_ref, bm2_ref,     # mlp.fc2: (1, H, D) bf16, (1, 1, D) f32
                        wg2_ref,              # gamma_2: (1, D, D) bf16
                        o_ref):               # (Bt, N, D) f32, resident across layers
    layer = pl.program_id(1)

    # Load the input activation once per batch tile; afterwards the output
    # block (constant block index along the layer axis) is the resident VMEM
    # activation carried from layer to layer.
    @pl.when(layer == 0)
    def _():
        o_ref[...] = x_ref[...]

    x = o_ref[...]                                   # (Bt, N, D) float32
    bt, n, d = x.shape

    def mm(a_f32, w_bf16):                           # bf16 MXU matmul, f32 accumulate
        return jnp.dot(a_f32.astype(jnp.bfloat16), w_bf16,
                       preferred_element_type=jnp.float32)

    # ---- token-mixing branch: x + gamma_1(attn(norm1(x)^T)^T) --------------
    h = mm(x.reshape(bt * n, d), wn1_ref[0]) + bn1_ref[0]        # norm1 (Linear)
    h = h.reshape(bt, n, d).astype(jnp.bfloat16)
    # cross-patch Linear expressed as a contraction over the patch axis:
    # out[b, p, d] = sum_m Wa[p, m] * h[b, m, d] + ba[p]   (no transposes)
    wa = jnp.broadcast_to(wa_ref[0], (bt, n, n))
    h = jnp.einsum("bnm,bmd->bnd", wa, h,
                   preferred_element_type=jnp.float32) + ba_ref[0]
    h = mm(h.reshape(bt * n, d), wg1_ref[0])                     # gamma_1 (no bias)
    x = x + h.reshape(bt, n, d)                                  # residual add, f32

    # ---- channel-MLP branch: x + gamma_2(mlp(norm2(x))) ---------------------
    h = mm(x.reshape(bt * n, d), wn2_ref[0]) + bn2_ref[0]        # norm2 (Linear)
    h = mm(h, wm1_ref[0]) + bm1_ref[0]                           # mlp.fc1
    h = jnp.maximum(h, 0.0)                                      # ReLU
    h = mm(h, wm2_ref[0]) + bm2_ref[0]                           # mlp.fc2
    h = mm(h, wg2_ref[0])                                        # gamma_2 (no bias)
    o_ref[...] = x + h.reshape(bt, n, d)                         # residual add, f32


# ---------------------------------------------------------------------------
# pallas_call wrapper
# ---------------------------------------------------------------------------
def _stream_spec(tail):
    # per-layer weight slice: stacked along axis 0 (depth), streamed one layer
    # per grid step and double-buffered (prefetched) by the pipeline.
    tail = tuple(tail)
    return pl.BlockSpec((1,) + tail, lambda i, l: (l,) + (0,) * len(tail))


def resmlp_blocks(x, params, *, batch_tile=None, vmem_limit_bytes=None):
    """Apply `depth` stacked layers_scale_mlp_blocks (depth == params axis 0)."""
    B, N, D = x.shape
    depth = params["wn1"].shape[0]
    H = params["wm1"].shape[2]
    bt = B if batch_tile is None else batch_tile
    assert B % bt == 0, "batch must be divisible by batch_tile"
    # TODO(synk): for the real ResMLP config (N=196) pad the patch axis to a
    # multiple of 8 (e.g. 200) with zero rows before calling and slice after.

    act_spec = pl.BlockSpec((bt, N, D), lambda i, l: (i, 0, 0))
    in_specs = [
        act_spec,
        _stream_spec((D, D)), _stream_spec((1, D)),     # norm1
        _stream_spec((N, N)), _stream_spec((N, 1)),     # attn (patch mixer)
        _stream_spec((D, D)),                           # gamma_1
        _stream_spec((D, D)), _stream_spec((1, D)),     # norm2
        _stream_spec((D, H)), _stream_spec((1, H)),     # mlp.fc1
        _stream_spec((H, D)), _stream_spec((1, D)),     # mlp.fc2
        _stream_spec((D, D)),                           # gamma_2
    ]
    return pl.pallas_call(
        _block_stack_kernel,
        out_shape=jax.ShapeDtypeStruct((B, N, D), jnp.float32),
        grid=(B // bt, depth),
        in_specs=in_specs,
        out_specs=act_spec,
        compiler_params=pltpu.CompilerParams(
            dimension_semantics=("parallel", "arbitrary"),
            vmem_limit_bytes=vmem_limit_bytes),
    )(x,
      params["wn1"], params["bn1"], params["wa"], params["ba"], params["wg1"],
      params["wn2"], params["bn2"], params["wm1"], params["bm1"],
      params["wm2"], params["bm2"], params["wg2"])


# ---------------------------------------------------------------------------
# Parameters (deterministic stand-ins for torch init) + pure-JAX reference
# ---------------------------------------------------------------------------
def init_params(key, *, dim, num_patches, depth):
    """Linear weights are drawn in torch (out, in) layout and stored
    pre-transposed as (in, out) bf16 so the kernel does jnp.dot(x, w) directly.
    The attn weight stays (out, in) because it is used as the LEFT operand
    (contraction over the input-patch axis). Biases stay f32."""
    hidden = int(4.0 * dim)
    ks = iter(jax.random.split(key, 16))

    def w_t(out_f, in_f):
        w = 0.02 * jax.random.normal(next(ks), (depth, out_f, in_f), jnp.float32)
        return jnp.swapaxes(w, 1, 2).astype(jnp.bfloat16)       # (depth, in, out)

    def b_row(out_f):
        return 0.02 * jax.random.normal(next(ks), (depth, 1, out_f), jnp.float32)

    wa = (0.02 * jax.random.normal(next(ks), (depth, num_patches, num_patches),
                                   jnp.float32)).astype(jnp.bfloat16)
    ba = 0.02 * jax.random.normal(next(ks), (depth, num_patches, 1), jnp.float32)

    return dict(
        wn1=w_t(dim, dim), bn1=b_row(dim),
        wa=wa, ba=ba,
        wg1=w_t(dim, dim),
        wn2=w_t(dim, dim), bn2=b_row(dim),
        wm1=w_t(hidden, dim), bm1=b_row(hidden),
        wm2=w_t(dim, hidden), bm2=b_row(dim),
        wg2=w_t(dim, dim),
    )


def reference_forward(x, params):
    """Literal torch-order reference (transpose -> Linear -> transpose), with
    the same bf16-input / f32-accumulation precision as the kernel."""
    depth = params["wn1"].shape[0]

    def linear(a, w_t, b=None):                      # w_t already (in, out)
        y = jnp.dot(a.astype(jnp.bfloat16), w_t,
                    preferred_element_type=jnp.float32)
        return y if b is None else y + b

    for l in range(depth):
        # x = x + gamma_1(attn(norm1(x).transpose(1, 2)).transpose(1, 2))
        h = linear(x, params["wn1"][l], params["bn1"][l])
        h = jnp.swapaxes(h, 1, 2)                                    # (B, D, N)
        h = linear(h, jnp.swapaxes(params["wa"][l], 0, 1),
                   params["ba"][l][:, 0])                            # attn
        h = jnp.swapaxes(h, 1, 2)                                    # (B, N, D)
        h = linear(h, params["wg1"][l])                              # gamma_1
        x = x + h
        # x = x + gamma_2(mlp(norm2(x)))
        h = linear(x, params["wn2"][l], params["bn2"][l])            # norm2
        h = jnp.maximum(linear(h, params["wm1"][l], params["bm1"][l]), 0.0)
        h = linear(h, params["wm2"][l], params["bm2"][l])            # fc2
        h = linear(h, params["wg2"][l])                              # gamma_2
        x = x + h
    return x


# ---------------------------------------------------------------------------
if __name__ == "__main__":
    # small config: 16 patches, dim 128 (hidden 512), 2 stacked blocks
    B, N, D, DEPTH = 2, 16, 128, 2

    key = jax.random.PRNGKey(0)
    kx, kp = jax.random.split(key)
    x = jax.random.normal(kx, (B, N, D), dtype=jnp.float32)
    params = init_params(kp, dim=D, num_patches=N, depth=DEPTH)

    fwd = jax.jit(lambda a: resmlp_blocks(a, params, batch_tile=B))
    out = jax.block_until_ready(fwd(x))

    ref = jax.block_until_ready(reference_forward(x, params))
    assert out.shape == (B, N, D)
    max_err = float(jnp.max(jnp.abs(out - ref)))
    assert jnp.allclose(out, ref, rtol=2e-3, atol=2e-3), (
        f"mismatch: max abs err {max_err}")

    print("KERNEL_OK")
</pallas_src>

<mosaic_0001>
module attributes {stable_mosaic.version = 11 : i64} {
  func.func @_block_stack_kernel(%arg0: i32, %arg1: i32, %arg2: memref<2x16x128xf32, #tpu.memory_space<vmem>>, %arg3: memref<1x128x128xbf16, #tpu.memory_space<vmem>>, %arg4: memref<1x1x128xf32, #tpu.memory_space<vmem>>, %arg5: memref<1x16x16xbf16, #tpu.memory_space<vmem>>, %arg6: memref<1x16x1xf32, #tpu.memory_space<vmem>>, %arg7: memref<1x128x128xbf16, #tpu.memory_space<vmem>>, %arg8: memref<1x128x128xbf16, #tpu.memory_space<vmem>>, %arg9: memref<1x1x128xf32, #tpu.memory_space<vmem>>, %arg10: memref<1x128x512xbf16, #tpu.memory_space<vmem>>, %arg11: memref<1x1x512xf32, #tpu.memory_space<vmem>>, %arg12: memref<1x512x128xbf16, #tpu.memory_space<vmem>>, %arg13: memref<1x1x128xf32, #tpu.memory_space<vmem>>, %arg14: memref<1x128x128xbf16, #tpu.memory_space<vmem>>, %arg15: memref<2x16x128xf32, #tpu.memory_space<vmem>>) attributes {dimension_semantics = [#tpu.dimension_semantics<parallel>, #tpu.dimension_semantics<arbitrary>], iteration_bounds = array<i64: 1, 2>, scalar_prefetch = 0 : i64, scratch_operands = 0 : i64, tpu.core_type = #tpu.core_type<tc>, window_params = [{transform_indices = @transform_0, window_bounds = array<i64: 2, 16, 128>}, {transform_indices = @transform_1, window_bounds = array<i64: 1, 128, 128>}, {transform_indices = @transform_2, window_bounds = array<i64: 1, 1, 128>}, {transform_indices = @transform_3, window_bounds = array<i64: 1, 16, 16>}, {transform_indices = @transform_4, window_bounds = array<i64: 1, 16, 1>}, {transform_indices = @transform_5, window_bounds = array<i64: 1, 128, 128>}, {transform_indices = @transform_6, window_bounds = array<i64: 1, 128, 128>}, {transform_indices = @transform_7, window_bounds = array<i64: 1, 1, 128>}, {transform_indices = @transform_8, window_bounds = array<i64: 1, 128, 512>}, {transform_indices = @transform_9, window_bounds = array<i64: 1, 1, 512>}, {transform_indices = @transform_10, window_bounds = array<i64: 1, 512, 128>}, {transform_indices = @transform_11, window_bounds = array<i64: 1, 1, 128>}, {transform_indices = @transform_12, window_bounds = array<i64: 1, 128, 128>}, {transform_indices = @transform_13, window_bounds = array<i64: 2, 16, 128>}]} {
    %c0_i32 = arith.constant 0 : i32
    %0 = arith.cmpi eq, %arg1, %c0_i32 : i32
    %1 = arith.extui %0 : i1 to i32
    %c0_i32_0 = arith.constant 0 : i32
    %2 = arith.cmpi ne, %1, %c0_i32_0 : i32
    scf.if %2 {
      %c0_49 = arith.constant 0 : index
      %c0_50 = arith.constant 0 : index
      %c0_51 = arith.constant 0 : index
      %66 = vector.load %arg2[%c0_49, %c0_50, %c0_51] : memref<2x16x128xf32, #tpu.memory_space<vmem>>, vector<2x16x128xf32>
      %c0_52 = arith.constant 0 : index
      %c0_53 = arith.constant 0 : index
      %c0_54 = arith.constant 0 : index
      %67 = vector.load %arg15[%c0_52, %c0_53, %c0_54] : memref<2x16x128xf32, #tpu.memory_space<vmem>>, vector<2x16x128xf32>
      tpu.vector_store %arg15[%c0_52, %c0_53, %c0_54], %66 {strides = array<i32>} : memref<2x16x128xf32, #tpu.memory_space<vmem>>, vector<2x16x128xf32>,
    } else {
    }
    %c0 = arith.constant 0 : index
    %c0_1 = arith.constant 0 : index
    %c0_2 = arith.constant 0 : index
    %3 = vector.load %arg15[%c0, %c0_1, %c0_2] : memref<2x16x128xf32, #tpu.memory_space<vmem>>, vector<2x16x128xf32>
    %4 = vector.shape_cast %3 : vector<2x16x128xf32> to vector<32x128xf32>
    %c0_3 = arith.constant 0 : index
    %c0_4 = arith.constant 0 : index
    %c0_5 = arith.constant 0 : index
    %5 = vector.load %arg3[%c0_3, %c0_4, %c0_5] : memref<1x128x128xbf16, #tpu.memory_space<vmem>>, vector<1x128x128xbf16>
    %6 = vector.shape_cast %5 : vector<1x128x128xbf16> to vector<128x128xbf16>
    %7 = arith.truncf %4 : vector<32x128xf32> to vector<32x128xbf16>
    %cst = arith.constant dense<0.000000e+00> : vector<32x128xf32>
    %8 = tpu.matmul %7, %6, %cst {dimension_numbers = #tpu.dot_dimension_numbers<[1], [0], [0], [1], [0, 0, 1, 1], [], []>} : vector<32x128xbf16>, vector<128x128xbf16>, vector<32x128xf32> -> vector<32x128xf32>
    %c0_6 = arith.constant 0 : index
    %c0_7 = arith.constant 0 : index
    %c0_8 = arith.constant 0 : index
    %9 = vector.load %arg4[%c0_6, %c0_7, %c0_8] : memref<1x1x128xf32, #tpu.memory_space<vmem>>, vector<1x1x128xf32>
    %10 = vector.shape_cast %9 : vector<1x1x128xf32> to vector<1x128xf32>
    %11 = vector.broadcast %10 : vector<1x128xf32> to vector<32x128xf32>
    %12 = arith.addf %8, %11 : vector<32x128xf32>
    %13 = vector.shape_cast %12 : vector<32x128xf32> to vector<2x16x128xf32>
    %14 = arith.truncf %13 : vector<2x16x128xf32> to vector<2x16x128xbf16>
    %c0_9 = arith.constant 0 : index
    %c0_10 = arith.constant 0 : index
    %c0_11 = arith.constant 0 : index
    %15 = vector.load %arg5[%c0_9, %c0_10, %c0_11] : memref<1x16x16xbf16, #tpu.memory_space<vmem>>, vector<1x16x16xbf16>
    %16 = vector.shape_cast %15 : vector<1x16x16xbf16> to vector<16x16xbf16>
    %17 = vector.shape_cast %16 : vector<16x16xbf16> to vector<1x16x16xbf16>
    %18 = vector.broadcast %17 : vector<1x16x16xbf16> to vector<2x16x16xbf16>
    "tpu.trace_start"() <{level = 10 : i32, message = "bnm,bmd->bnd"}> : () -> ()
    %cst_12 = arith.constant dense<0.000000e+00> : vector<2x16x128xf32>
    %19 = tpu.matmul %18, %14, %cst_12 {dimension_numbers = #tpu.dot_dimension_numbers<[2], [1], [1], [2], [0, 0, 0, 1, 1, 2], [0], [0]>} : vector<2x16x16xbf16>, vector<2x16x128xbf16>, vector<2x16x128xf32> -> vector<2x16x128xf32>
    "tpu.trace_stop"() : () -> ()
    %c0_13 = arith.constant 0 : index
    %c0_14 = arith.constant 0 : index
    %c0_15 = arith.constant 0 : index
    %20 = vector.load %arg6[%c0_13, %c0_14, %c0_15] : memref<1x16x1xf32, #tpu.memory_space<vmem>>, vector<1x16x1xf32>
    %21 = vector.shape_cast %20 : vector<1x16x1xf32> to vector<16x1xf32>
    %22 = vector.shape_cast %21 : vector<16x1xf32> to vector<1x16x1xf32>
    %23 = vector.broadcast %22 : vector<1x16x1xf32> to vector<2x16x128xf32>
    %24 = arith.addf %19, %23 : vector<2x16x128xf32>
    %25 = vector.shape_cast %24 : vector<2x16x128xf32> to vector<32x128xf32>
    %c0_16 = arith.constant 0 : index
    %c0_17 = arith.constant 0 : index
    %c0_18 = arith.constant 0 : index
    %26 = vector.load %arg7[%c0_16, %c0_17, %c0_18] : memref<1x128x128xbf16, #tpu.memory_space<vmem>>, vector<1x128x128xbf16>
    %27 = vector.shape_cast %26 : vector<1x128x128xbf16> to vector<128x128xbf16>
    %28 = arith.truncf %25 : vector<32x128xf32> to vector<32x128xbf16>
    %cst_19 = arith.constant dense<0.000000e+00> : vector<32x128xf32>
    %29 = tpu.matmul %28, %27, %cst_19 {dimension_numbers = #tpu.dot_dimension_numbers<[1], [0], [0], [1], [0, 0, 1, 1], [], []>} : vector<32x128xbf16>, vector<128x128xbf16>, vector<32x128xf32> -> vector<32x128xf32>
    %30 = vector.shape_cast %29 : vector<32x128xf32> to vector<2x16x128xf32>
    %31 = arith.addf %3, %30 : vector<2x16x128xf32>
    %32 = vector.shape_cast %31 : vector<2x16x128xf32> to vector<32x128xf32>
    %c0_20 = arith.constant 0 : index
    %c0_21 = arith.constant 0 : index
    %c0_22 = arith.constant 0 : index
    %33 = vector.load %arg8[%c0_20, %c0_21, %c0_22] : memref<1x128x128xbf16, #tpu.memory_space<vmem>>, vector<1x128x128xbf16>
    %34 = vector.shape_cast %33 : vector<1x128x128xbf16> to vector<128x128xbf16>
    %35 = arith.truncf %32 : vector<32x128xf32> to vector<32x128xbf16>
    %cst_23 = arith.constant dense<0.000000e+00> : vector<32x128xf32>
    %36 = tpu.matmul %35, %34, %cst_23 {dimension_numbers = #tpu.dot_dimension_numbers<[1], [0], [0], [1], [0, 0, 1, 1], [], []>} : vector<32x128xbf16>, vector<128x128xbf16>, vector<32x128xf32> -> vector<32x128xf32>
    %c0_24 = arith.constant 0 : index
    %c0_25 = arith.constant 0 : index
    %c0_26 = arith.constant 0 : index
    %37 = vector.load %arg9[%c0_24, %c0_25, %c0_26] : memref<1x1x128xf32, #tpu.memory_space<vmem>>, vector<1x1x128xf32>
    %38 = vector.shape_cast %37 : vector<1x1x128xf32> to vector<1x128xf32>
    %39 = vector.broadcast %38 : vector<1x128xf32> to vector<32x128xf32>
    %40 = arith.addf %36, %39 : vector<32x128xf32>
    %c0_27 = arith.constant 0 : index
    %c0_28 = arith.constant 0 : index
    %c0_29 = arith.constant 0 : index
    %41 = vector.load %arg10[%c0_27, %c0_28, %c0_29] : memref<1x128x512xbf16, #tpu.memory_space<vmem>>, vector<1x128x512xbf16>
    %42 = vector.shape_cast %41 : vector<1x128x512xbf16> to vector<128x512xbf16>
    %43 = arith.truncf %40 : vector<32x128xf32> to vector<32x128xbf16>
    %cst_30 = arith.constant dense<0.000000e+00> : vector<32x512xf32>
    %44 = tpu.matmul %43, %42, %cst_30 {dimension_numbers = #tpu.dot_dimension_numbers<[1], [0], [0], [1], [0, 0, 1, 1], [], []>} : vector<32x128xbf16>, vector<128x512xbf16>, vector<32x512xf32> -> vector<32x512xf32>
    %c0_31 = arith.constant 0 : index
    %c0_32 = arith.constant 0 : index
    %c0_33 = arith.constant 0 : index
    %45 = vector.load %arg11[%c0_31, %c0_32, %c0_33] : memref<1x1x512xf32, #tpu.memory_space<vmem>>, vector<1x1x512xf32>
    %46 = vector.shape_cast %45 : vector<1x1x512xf32> to vector<1x512xf32>
    %47 = vector.broadcast %46 : vector<1x512xf32> to vector<32x512xf32>
    %48 = arith.addf %44, %47 : vector<32x512xf32>
    %cst_34 = arith.constant 0.000000e+00 : f32
    %49 = vector.broadcast %cst_34 : f32 to vector<32x512xf32>
    %50 = arith.maximumf %48, %49 : vector<32x512xf32>
    %c0_35 = arith.constant 0 : index
    %c0_36 = arith.constant 0 : index
    %c0_37 = arith.constant 0 : index
    %51 = vector.load %arg12[%c0_35, %c0_36, %c0_37] : memref<1x512x128xbf16, #tpu.memory_space<vmem>>, vector<1x512x128xbf16>
    %52 = vector.shape_cast %51 : vector<1x512x128xbf16> to vector<512x128xbf16>
    %53 = arith.truncf %50 : vector<32x512xf32> to vector<32x512xbf16>
    %cst_38 = arith.constant dense<0.000000e+00> : vector<32x128xf32>
    %54 = tpu.matmul %53, %52, %cst_38 {dimension_numbers = #tpu.dot_dimension_numbers<[1], [0], [0], [1], [0, 0, 1, 1], [], []>} : vector<32x512xbf16>, vector<512x128xbf16>, vector<32x128xf32> -> vector<32x128xf32>
    %c0_39 = arith.constant 0 : index
    %c0_40 = arith.constant 0 : index
    %c0_41 = arith.constant 0 : index
    %55 = vector.load %arg13[%c0_39, %c0_40, %c0_41] : memref<1x1x128xf32, #tpu.memory_space<vmem>>, vector<1x1x128xf32>
    %56 = vector.shape_cast %55 : vector<1x1x128xf32> to vector<1x128xf32>
    %57 = vector.broadcast %56 : vector<1x128xf32> to vector<32x128xf32>
    %58 = arith.addf %54, %57 : vector<32x128xf32>
    %c0_42 = arith.constant 0 : index
    %c0_43 = arith.constant 0 : index
    %c0_44 = arith.constant 0 : index
    %59 = vector.load %arg14[%c0_42, %c0_43, %c0_44] : memref<1x128x128xbf16, #tpu.memory_space<vmem>>, vector<1x128x128xbf16>
    %60 = vector.shape_cast %59 : vector<1x128x128xbf16> to vector<128x128xbf16>
    %61 = arith.truncf %58 : vector<32x128xf32> to vector<32x128xbf16>
    %cst_45 = arith.constant dense<0.000000e+00> : vector<32x128xf32>
    %62 = tpu.matmul %61, %60, %cst_45 {dimension_numbers = #tpu.dot_dimension_numbers<[1], [0], [0], [1], [0, 0, 1, 1], [], []>} : vector<32x128xbf16>, vector<128x128xbf16>, vector<32x128xf32> -> vector<32x128xf32>
    %63 = vector.shape_cast %62 : vector<32x128xf32> to vector<2x16x128xf32>
    %64 = arith.addf %31, %63 : vector<2x16x128xf32>
    %c0_46 = arith.constant 0 : index
    %c0_47 = arith.constant 0 : index
    %c0_48 = arith.constant 0 : index
    %65 = vector.load %arg15[%c0_46, %c0_47, %c0_48] : memref<2x16x128xf32, #tpu.memory_space<vmem>>, vector<2x16x128xf32>
    tpu.vector_store %arg15[%c0_46, %c0_47, %c0_48], %64 {strides = array<i32>} : memref<2x16x128xf32, #tpu.memory_space<vmem>>, vector<2x16x128xf32>,
    return
  }
  func.func @transform_0(%arg0: i32, %arg1: i32) -> (i32, i32, i32) {
    %c0_i32 = arith.constant 0 : i32
    %c0_i32_0 = arith.constant 0 : i32
    %c0_i32_1 = arith.constant 0 : i32
    return %arg0, %c0_i32, %c0_i32_0 : i32, i32, i32
  }
  func.func @transform_1(%arg0: i32, %arg1: i32) -> (i32, i32, i32) {
    %c0_i32 = arith.constant 0 : i32
    %c0_i32_0 = arith.constant 0 : i32
    %c0_i32_1 = arith.constant 0 : i32
    return %arg1, %c0_i32, %c0_i32_0 : i32, i32, i32
  }
  func.func @transform_2(%arg0: i32, %arg1: i32) -> (i32, i32, i32) {
    %c0_i32 = arith.constant 0 : i32
    %c0_i32_0 = arith.constant 0 : i32
    %c0_i32_1 = arith.constant 0 : i32
    return %arg1, %c0_i32, %c0_i32_0 : i32, i32, i32
  }
  func.func @transform_3(%arg0: i32, %arg1: i32) -> (i32, i32, i32) {
    %c0_i32 = arith.constant 0 : i32
    %c0_i32_0 = arith.constant 0 : i32
    %c0_i32_1 = arith.constant 0 : i32
    return %arg1, %c0_i32, %c0_i32_0 : i32, i32, i32
  }
  func.func @transform_4(%arg0: i32, %arg1: i32) -> (i32, i32, i32) {
    %c0_i32 = arith.constant 0 : i32
    %c0_i32_0 = arith.constant 0 : i32
    %c0_i32_1 = arith.constant 0 : i32
    return %arg1, %c0_i32, %c0_i32_0 : i32, i32, i32
  }
  func.func @transform_5(%arg0: i32, %arg1: i32) -> (i32, i32, i32) {
    %c0_i32 = arith.constant 0 : i32
    %c0_i32_0 = arith.constant 0 : i32
    %c0_i32_1 = arith.constant 0 : i32
    return %arg1, %c0_i32, %c0_i32_0 : i32, i32, i32
  }
  func.func @transform_6(%arg0: i32, %arg1: i32) -> (i32, i32, i32) {
    %c0_i32 = arith.constant 0 : i32
    %c0_i32_0 = arith.constant 0 : i32
    %c0_i32_1 = arith.constant 0 : i32
    return %arg1, %c0_i32, %c0_i32_0 : i32, i32, i32
  }
  func.func @transform_7(%arg0: i32, %arg1: i32) -> (i32, i32, i32) {
    %c0_i32 = arith.constant 0 : i32
    %c0_i32_0 = arith.constant 0 : i32
    %c0_i32_1 = arith.constant 0 : i32
    return %arg1, %c0_i32, %c0_i32_0 : i32, i32, i32
  }
  func.func @transform_8(%arg0: i32, %arg1: i32) -> (i32, i32, i32) {
    %c0_i32 = arith.constant 0 : i32
    %c0_i32_0 = arith.constant 0 : i32
    %c0_i32_1 = arith.constant 0 : i32
    return %arg1, %c0_i32, %c0_i32_0 : i32, i32, i32
  }
  func.func @transform_9(%arg0: i32, %arg1: i32) -> (i32, i32, i32) {
    %c0_i32 = arith.constant 0 : i32
    %c0_i32_0 = arith.constant 0 : i32
    %c0_i32_1 = arith.constant 0 : i32
    return %arg1, %c0_i32, %c0_i32_0 : i32, i32, i32
  }
  func.func @transform_10(%arg0: i32, %arg1: i32) -> (i32, i32, i32) {
    %c0_i32 = arith.constant 0 : i32
    %c0_i32_0 = arith.constant 0 : i32
    %c0_i32_1 = arith.constant 0 : i32
    return %arg1, %c0_i32, %c0_i32_0 : i32, i32, i32
  }
  func.func @transform_11(%arg0: i32, %arg1: i32) -> (i32, i32, i32) {
    %c0_i32 = arith.constant 0 : i32
    %c0_i32_0 = arith.constant 0 : i32
    %c0_i32_1 = arith.constant 0 : i32
    return %arg1, %c0_i32, %c0_i32_0 : i32, i32, i32
  }
  func.func @transform_12(%arg0: i32, %arg1: i32) -> (i32, i32, i32) {
    %c0_i32 = arith.constant 0 : i32
    %c0_i32_0 = arith.constant 0 : i32
    %c0_i32_1 = arith.constant 0 : i32
    return %arg1, %c0_i32, %c0_i32_0 : i32, i32, i32
  }
  func.func @transform_13(%arg0: i32, %arg1: i32) -> (i32, i32, i32) {
    %c0_i32 = arith.constant 0 : i32
    %c0_i32_0 = arith.constant 0 : i32
    %c0_i32_1 = arith.constant 0 : i32
    return %arg0, %c0_i32, %c0_i32_0 : i32, i32, i32
  }
}

</mosaic_0001>

<bundles_post_ra>
// kernel: _lambda_.1
= control target key start
LH: loop header
LB: loop body
LE: loop exit
PB: predicated region body
PF: predicated region fallthrough
CT: control target
= control target key end

     0   :  { %s3376_s0 = inlined_call_operand.hbm [shape: f32[2,16,128], index: 0, kind: input, shape index: {}]   ;;  %s3377_s1 = inlined_call_operand.vmem [shape: bf16[2,128,128], index: 1, kind: input, shape index: {}]   ;;  %s3378_s2 = inlined_call_operand.vmem [shape: f32[2,1,128], index: 2, kind: input, shape index: {}]   ;;  %s3379_s3 = inlined_call_operand.vmem [shape: bf16[2,16,16], index: 3, kind: input, shape index: {}]   ;;  %s3380_s4 = inlined_call_operand.hbm [shape: f32[2,16,1], index: 4, kind: input, shape index: {}]   ;;  %s3381_s5 = inlined_call_operand.vmem [shape: bf16[2,128,128], index: 5, kind: input, shape index: {}]   ;;  %s3382_s6 = inlined_call_operand.vmem [shape: bf16[2,128,128], index: 6, kind: input, shape index: {}]   ;;  %s3383_s7 = inlined_call_operand.vmem [shape: f32[2,1,128], index: 7, kind: input, shape index: {}]   ;;  %s3384_s8 = inlined_call_operand.vmem [shape: bf16[2,128,512], index: 8, kind: input, shape index: {}]   ;;  %s3385_s9 = inlined_call_operand.vmem [shape: f32[2,1,512], index: 9, kind: input, shape index: {}]   ;;  %s3386_s10 = inlined_call_operand.vmem [shape: bf16[2,512,128], index: 10, kind: input, shape index: {}]   ;;  %s3387_s11 = inlined_call_operand.vmem [shape: f32[2,1,128], index: 11, kind: input, shape index: {}]   ;;  %s3388_s12 = inlined_call_operand.vmem [shape: bf16[2,128,128], index: 12, kind: input, shape index: {}]   ;;  %s3389_s13 = inlined_call_operand.hbm [shape: f32[2,16,128], index: 13, kind: output, shape index: {}]  }
   0x1   :  { %3402 = sst [smem:[#allocation17_spill]] %s3376_s0 }
   0x2   :  { %3403 = sst [smem:[#allocation18_spill]] %s3377_s1 }
   0x3   :  { %3404 = sst [smem:[#allocation19_spill]] %s3379_s3 }
   0x4   :  { %3405 = sst [smem:[#allocation20_spill]] %s3380_s4 }
   0x5   :  { %3406 = sst [smem:[#allocation21_spill]] %s3381_s5 }
   0x6   :  { %3407 = sst [smem:[#allocation22_spill]] %s3382_s6 }
   0x7   :  { %3408 = sst [smem:[#allocation23_spill]] %s3385_s9 }
   0x8   :  { %3409 = sst [smem:[#allocation24_spill]] %s3386_s10 }
   0x9   :  { %3410 = sst [smem:[#allocation25_spill]] %s3387_s11 }
   0xa   :  { %3411 = sst [smem:[#allocation26_spill]] %s3388_s12 }
   0xb   :  { %3412 = sst [smem:[#allocation27_spill]] %s3389_s13 }
   0xc   :  { %18 = vsyncpa [#allocation3], 0 }
   0xd   :  { %19 = vsyncpa [#allocation6], 0 }
   0xe   :  { %21 = vsyncpa [#allocation6 + $0x1], 0 }
   0xf   :  { %22 = vsyncpa [#allocation4], 0  ;;  %s2967_s25 = smov 0   ;;  %s2969_s26 = smov 0  }
  0x10   :  { %s2971_s27 = smov 0   ;;  %s2973_s28 = smov 0  }
  0x11   :  { %s2975_s29 = smov 0   ;;  %s2977_s30 = smov 0  }
  0x12 LB: > { %3413 = sst [smem:[#allocation11_spill]] %s2869_s26  ;;  %s3390_s14 = sadd.s32 4294967295, %s2885_s30   ;;  %s2885_s30 = sphi %s2977_s30, %s28_s30   ;;  %s2881_s29 = sphi %s2975_s29, %s3452_s29   ;;  %s2877_s28 = sphi %s2973_s28, %s3451_s28   ;;  %s2873_s27 = sphi %s2971_s27, %s3450_s27   ;;  %s2869_s26 = sphi %s2969_s26, %s3449_s26   ;;  %s2865_s25 = sphi %s2967_s25, %s3448_s25  }
  0x13   : > { %3414 = sst [smem:[#allocation12_spill]] %s2873_s27  ;;  %p164_p0 = scmp.ne.s32.totalorder %s2869_s26, %s2865_s25 }
  0x14   : > { %3415 = sst [smem:[#allocation13_spill]] %s2881_s29  ;;  %p2999_p1 = scmp.eq.s32.totalorder %s3390_s14, 0 }
  0x15   : > { %3416 = sst [smem:[#allocation14_spill]] %s2885_s30  ;;  %p2218_p2 = scmp.ge.s32.totalorder %s2885_s30, 1 }
  0x16   : > { %s3417_s15 = scalar_select %p2999_p1, 1, 0 }
  0x17   : > { %p409_p3 = scmp.lt.s32.totalorder %s2885_s30, 3  ;;  %p3007_p4 = por %p2999_p1, %p164_p0 }
  0x18   : > { %s2887_s18 = smov [#allocation2]   ;;  %s37_s21 = sadd.s32 1, %s2881_s29 }
  0x19   : > { %s3418_s16 = scalar_select %p3007_p4, 1, 0 }
  0x1a   : > { %p3011_p5 = pnand %p2218_p2, %p409_p3  ;;  %s425_s19 = sshll.u32 %s2887_s18, 4  ;;  %s426_s19 = int_to_ptr.vmem [resolvable:$true] %s425_s19 }
  0x1b   : > { %s3421_s0 = sld [smem:[#allocation17_spill]] }
  0x1c   : > { %s3419_s17 = scalar_select %p3011_p5, 1, 0 }
  0x1d   : > { %p2559_p6 = pneg %p3011_p5 }
  0x1f   : > { %p3019_p7 = pnand %p2559_p6, %p2999_p1 }
  0x21   : > { %s2743_s24 = scalar_lea.hbm %s3421_s0, 512  ;;  %p2745_p9 = pneg %p3019_p7 }
  0x22   : > { %p2744_p8 = scmp.ne.s32.totalorder %s3421_s0, %s2743_s24  ;;  %p2750_p12 = scmp.lt.u32.totalorder %s2743_s24, %s3421_s0 }
  0x24   : > { %p2746_p10 = pnand %p2745_p9, %p2744_p8 }
  0x26   : > { %p2747_p11 = pneg %p2746_p10 }
  0x28   : > { %p2752_p13 = pnand %p2750_p12, %p2747_p11 }
  0x2a   : > { %2755 = shalt.err (!%p2752_p13)
}
  0x2b   : > { %s2756_s12 = scalar_lea.vmem %s426_s19, 512  ;;  %p2764_p6 = scmp.lt.s32.totalorder %s426_s19, %s426_s19 }
  0x2c   : > { %p2757_p0 = scmp.ne.s32.totalorder %s426_s19, %s2756_s12  ;;  %p2765_p4 = scmp.lt.s32.totalorder %s2756_s12, %s2756_s12 }
  0x2e   : > { %p2759_p2 = pnand %p2757_p0, %p2745_p9  ;;  %p2766_p1 = por %p2765_p4, %p2764_p6 }
  0x30   : > { %p2760_p3 = pneg %p2759_p2 }
  0x32   : > { %p2767_p5 = pnand %p2766_p1, %p2760_p3 }
  0x34   : > { %2770 = shalt.err (!%p2767_p5)
}
  0x35   : > { %s3396_s14 = smov 128   ;;  %s2889_s13 = smov 8  }
  0x36   : > { %2562 = dma.hbm_to_vmem [thread:$0]  (!%p3019_p7), %s3421_s0, 512, %s426_s19, [#allocation3], %s3396_s14, %s3396_s14, %s2889_s13  }
  0x37   : > { %p38_p1 = scmp.ge.s32.totalorder %s37_s21, 2  ;;  %s151_s23 = sadd.s32 1, %s2873_s27 }
  0x38   : > { %p158_p4 = scmp.ne.s32.totalorder %s2873_s27, %s2869_s26  ;;  %p159_p5 = scmp.eq.s32.totalorder %s2885_s30, 0 }
  0x39   : > { %s3454_s21 = smov (%p38_p1, %s37_s21), 0  ;;  %p2568_p9 = scmp.lt.s32.totalorder %s2885_s30, 2 }
  0x3a   : > { %3422 = sst [smem:[#allocation15_spill]] %s3454_s21  ;;  %p160_p8 = por %p159_p5, %p158_p4 }
  0x3b   : > { %s148_s24 = ssub.s32 %s2881_s29, %s3454_s21  ;;  %s461_s25 = sand.u32 1, %s2873_s27  }
  0x3c   : > { %p149_p10 = scmp.eq.s32.totalorder %s148_s24, 0  ;;  %s2221_s20 = sshll.u32 %s461_s25, 4 }
  0x3d   : > { %s2349_s18 = sshll.u32 %s2881_s29, 8  ;;  %s3424_s4 = sld [smem:[#allocation20_spill]] }
  0x3e   : > { %s3055_s11 = scalar_select %p149_p10, %s2873_s27, %s151_s23  }
  0x3f   : > { %s465_s12 = scalar_lea.vmem [#allocation5], %s2221_s20  ;;  %p3062_p7 = pnand %p2568_p9, %p160_p8 }
  0x40   : > { %3423 = sst [smem:[#allocation16_spill]] %s3055_s11  ;;  %s472_s22 = sshll.u32 %s465_s12, 4  ;;  %s3066_s22 = int_to_ptr.vmem [resolvable:$true] %s472_s22 }
  0x41   : > { %s3068_s23 = scalar_lea.sflag [#allocation6], %s461_s25  ;;  %p2773_p12 = pneg %p3062_p7 }
  0x43   : > { %s3060_s19 = scalar_lea.hbm %s3424_s4, %s2349_s18  ;;  %s2776_s20 = scalar_lea.hbm %s3424_s4, 512 }
  0x44   : > { %s2771_s24 = scalar_lea.hbm %s3060_s19, 256  ;;  %p2777_p2 = scmp.lt.u32.totalorder %s3060_s19, %s3424_s4 }
  0x45   : > { %p2772_p11 = scmp.ne.s32.totalorder %s3060_s19, %s2771_s24  ;;  %p2778_p3 = scmp.lt.u32.totalorder %s2776_s20, %s2771_s24 }
  0x46   : > { %p2780_p1 = scmp.lt.u32.totalorder %s2771_s24, %s3060_s19 }
  0x47   : > { %p2774_p13 = pnand %p2773_p12, %p2772_p11  ;;  %p2779_p6 = por %p2778_p3, %p2777_p2 }
  0x49   : > { %p2775_p0 = pneg %p2774_p13  ;;  %p2781_p4 = por %p2780_p1, %p2779_p6 }
  0x4b   : > { %p2782_p5 = pnand %p2781_p4, %p2775_p0 }
  0x4d   : > { %2785 = shalt.err (!%p2782_p5)
}
  0x4e   : > { %s2786_s25 = scalar_lea.vmem %s3066_s22, 256  ;;  %s2890_s9 = smov [#allocation5]  }
  0x4f   : > { %p2787_p8 = scmp.ne.s32.totalorder %s3066_s22, %s2786_s25  ;;  %s2791_s10 = sshll.u32 %s2890_s9, 4  ;;  %s2792_s10 = int_to_ptr.vmem [resolvable:$false] %s2791_s10 }
  0x50   : > { %s2793_s18 = scalar_lea.vmem %s2792_s10, 512  ;;  %p2794_p11 = scmp.lt.s32.totalorder %s3066_s22, %s2792_s10 }
  0x51   : > { %p2789_p9 = pnand %p2787_p8, %p2773_p12  ;;  %p2795_p13 = scmp.lt.s32.totalorder %s2793_s18, %s2786_s25 }
  0x53   : > { %p2790_p10 = pneg %p2789_p9  ;;  %p2796_p2 = por %p2795_p13, %p2794_p11 }
  0x55   : > { %p2797_p3 = pnand %p2796_p2, %p2790_p10 }
  0x57   : > { %2800 = shalt.err (!%p2797_p3)
}
  0x58   : > { %s3426_s24 = smov 128   ;;  %p3427_p12 = scmp.ne.s32.totalorder %s3419_s17, 0 }
  0x59   : > { %2566 = dma.hbm_to_vmem [thread:$0]  (!%p3062_p7), %s3060_s19, 256, %s3066_s22, %s3068_s23, %s3426_s24, %s3426_s24, %s2889_s13  }
  0x5a   : > { %543 = sbr.rel (%p3427_p12) target bundleno = 1732 (0x6c4), region = 72  ;;  %p3428_p0 = scmp.ne.s32.totalorder (!%p3427_p12), %s3417_s15, 0 }
  0x61   : > { %2852 = dma.done.wait (%p3428_p0), [#allocation3], 512  }
  0x62   : > { %2854 = vsyncadd (%p3428_p0), [#allocation3], 4294966784  ;;  %s549_s20 = sand.u32 1, %s2869_s26   ;;  %p3429_p6 = scmp.ne.s32.totalorder %s3418_s16, 0 }
  0x63   : > { %s3106_s14 = sshll.u32 %s549_s20, 4  ;;  %s550_s12 = scalar_lea.sflag [#allocation6], %s549_s20 }
  0x64   : > { %2856 = dma.done.wait (%p3429_p6), %s550_s12, 256  }
  0x65   : > { %2858 = vsyncadd (%p3429_p6), %s550_s12, 4294967040  ;;  %p640_p7 = scmp.lt.s32.totalorder %s2877_s28, 1  ;;  %s3430_s1 = sld [smem:[#allocation18_spill]] }
  0x66   : > { %s3431_s3 = sld [smem:[#allocation19_spill]]  ;;  %s3432_s5 = sld [smem:[#allocation21_spill]] }
  0x67   : > { %s3115_s17 = scalar_select %p640_p7, %s2877_s28, 1 }
  0x68   : > { %s3433_s6 = sld [smem:[#allocation22_spill]]  ;;  %s3434_s12 = sld [smem:[#allocation23_spill]] }
  0x69   : > { %s2350_s15 = sshll.u32 %s3115_s17, 6  ;;  %s2351_s10 = sshll.u32 %s3115_s17, 3 }
  0x6a   : > { %s2354_s22 = sshll.u32 %s3115_s17, 8  ;;  %s3435_s21 = sld [smem:[#allocation24_spill]] }
  0x6b   : > { %s3125_s9 = scalar_lea.vmem %s3430_s1, %s2350_s15  ;;  %s2237_s1 = sshll.u32 %s3115_s17, 2 }
  0x6c   : > { %s3131_s20 = scalar_lea.vmem %s3431_s3, %s2351_s10  ;;  %s3136_s0 = scalar_lea.vmem %s3432_s5, %s2350_s15 }
  0x6d   : > { %s3152_s10 = scalar_lea.vmem %s3384_s8, %s2354_s22  ;;  %s3436_s23 = sld [smem:[#allocation25_spill]] }
  0x6e   : > { %s3141_s13 = scalar_lea.vmem %s3433_s6, %s2350_s15  ;;  %s3157_s3 = scalar_lea.vmem %s3434_s12, %s2237_s1 }
  0x6f   : > { %s3437_s30 = sld [smem:[#allocation26_spill]]  ;;  %p2242_p1 = scmp.ne.s32.totalorder %s2877_s28, 0 }
  0x70   : > { %s3162_s6 = scalar_lea.vmem %s3435_s21, %s2354_s22  ;;  %v694_v0 = vld [vmem:[#allocation2] sm:$0xff] (!%p2242_p1)  ;;  %v695_v1 = vld [vmem:[#allocation2 + $0x8] sm:$0xff] (!%p2242_p1)  ;;  %v696_v2 = vld [vmem:[#allocation2 + $0x10] sm:$0xff] (!%p2242_p1) }
  0x71   : > { %693 = sbr.rel (%p2242_p1) target bundleno = 120 (0x78), region = 84  ;;  %698 = vst [vmem:[#allocation7] sm:$0xff] (!%p2242_p1), %v694_v0  ;;  %699 = vst [vmem:[#allocation7 + $0x8] sm:$0xff] (!%p2242_p1), %v695_v1  ;;  %v697_v3 = vld [vmem:[#allocation2 + $0x18] sm:$0xff] (!%p2242_p1) }
  0x72   : > { %700 = vst [vmem:[#allocation7 + $0x10] sm:$0xff] (!%p2242_p1), %v696_v2  ;;  %701 = vst [vmem:[#allocation7 + $0x18] sm:$0xff] (!%p2242_p1), %v697_v3 }
  0x73   : > { %s682_s16 = scalar_lea.vmem %s3436_s23, %s3115_s17 }
  0x75   : > { %s3171_s29 = scalar_lea.vmem %s3437_s30, %s2350_s15 }
  0x78 PF: > { %v2630_v4 = vld [vmem:[%s3125_s9] sm:$0xff]   ;;  %v2631_v5 = vld [vmem:[%s3125_s9 + $0x8] sm:$0xff]   ;;  %v2632_v6 = vld [vmem:[%s3125_s9 + $0x10] sm:$0xff]   ;;  %v2891_v18 = vmov 0.0   ;;  %vm2892_vm0 = vmmov 0   ;;  %s3438_s1 = scalar_lea.vmem [#allocation5], %s3106_s14  ;;  %s3440_s27 = scalar_lea.vmem %s3378_s2, %s3115_s17 }
  0x79   : > { %2457 = vmatprep.subr.bf16.mxu0 %v2630_v4  ;;  %v2633_v7 = vld [vmem:[%s3125_s9 + $0x18] sm:$0xff]   ;;  %v3178_v8 = vld [vmem:[#allocation7] sm:$0xff]  ;;  %v3180_v9 = vld [vmem:[#allocation7 + $0x8] sm:$0xff]  ;;  %2477 = vmatprep.subr.bf16.mxu1 %v2891_v18  ;;  %v2893_v20 = vmov 0   ;;  %s3439_s5 = smov %s3438_s1  ;;  %vm849_vm1 = vcmask 130048   ;;  %s3441_s30 = scalar_lea.vmem %s3383_s7, %s3115_s17 }
  0x7a   : > { %2458 = vmatpush3.bf16.msra.mxu0 %v2630_v4  ;;  %v722_v10 = vpack.c.bf16 %v3180_v9, %v3178_v8  ;;  %v2634_v11 = vld [vmem:[%s3125_s9 + $0x20] sm:$0xff]   ;;  %v2635_v12 = vld [vmem:[%s3125_s9 + $0x28] sm:$0xff]   ;;  %v2636_v13 = vld [vmem:[%s3125_s9 + $0x30] sm:$0xff]   ;;  %2479 = vmatprep.mubr.msk.bf16.mxu1 %vm2892_vm0, %v2891_v18  ;;  %s3443_s17 = sld [smem:[#allocation14_spill]]  ;;  %s2894_s15 = smov [#allocation7]  }
  0x7b   : > { %2459 = vmatprep.subr.bf16.mxu0 %v2631_v5  ;;  %v2637_v14 = vld [vmem:[%s3125_s9 + $0x38] sm:$0xff]   ;;  %v3188_v15 = vld [vmem:[#allocation7 + $0x10] sm:$0xff]  ;;  %2629 = vset.pattern.permute.xlu0 %v2893_v20  ;;  %v833_v21 = vld [vmem:[%s3439_s5 + $0x8] sm:$0xff]  ;;  %s2016_s22 = sshll.u32 %s2894_s15, 4  ;;  %s2017_s22 = int_to_ptr.vmem [resolvable:$true] %s2016_s22 }
  0x7c   : > { %2473 = vmatprep.mubr.bf16.mxu0 %v722_v10  ;;  %v3190_v16 = vld [vmem:[#allocation7 + $0x18] sm:$0xff]  ;;  %v832_v19 = vld [vmem:[%s3438_s1] sm:$0xff]  ;;  %v2640_v35 = vld [vmem:[%s3136_s0 + $0x8] sm:$0xff]   ;;  %p2808_p10 = scmp.lt.s32.totalorder %s2017_s22, %s2017_s22 }
  0x7d   : > { %v723_v17 = vpack.c.bf16 %v3190_v16, %v3188_v15  ;;  %836 = vperm.xlu0 %2629, %v832_v19   ;;  %v2243_v23 = vld [vmem:[%s3440_s27] ss:$0 sm:$0xff]  ;;  %v2641_v36 = vld [vmem:[%s3136_s0 + $0x10] sm:$0xff]   ;;  %v2642_v37 = vld [vmem:[%s3136_s0 + $0x18] sm:$0xff]  }
  0x7e   : > { %2460 = vmatpush3.bf16.msra.mxu0 %v2631_v5  ;;  %v2638_v33 = vld [vmem:[%s3131_s20] sm:$0xff]   ;;  %v2644_v39 = vld [vmem:[%s3136_s0 + $0x28] sm:$0xff]   ;;  %v2645_v40 = vld [vmem:[%s3136_s0 + $0x30] sm:$0xff]  }
  0x7f   : > { %2461 = vmatprep.subr.bf16.mxu0 %v2632_v6  ;;  %v2639_v34 = vld [vmem:[%s3136_s0] sm:$0xff]   ;;  %v2646_v41 = vld [vmem:[%s3136_s0 + $0x38] sm:$0xff]   ;;  %v2648_v43 = vld [vmem:[%s3141_s13 + $0x8] sm:$0xff]  }
  0x80   : > { %v2643_v38 = vld [vmem:[%s3136_s0 + $0x20] sm:$0xff]   ;;  %v2649_v44 = vld [vmem:[%s3141_s13 + $0x10] sm:$0xff]   ;;  %v2650_v45 = vld [vmem:[%s3141_s13 + $0x18] sm:$0xff]   ;;  %s3444_s9 = sadd.s32 4294967295, %s3443_s17  }
  0x81   : > { %841 = vperm.xlu0 %2629, %v833_v21   ;;  %v2647_v42 = vld [vmem:[%s3141_s13] sm:$0xff]   ;;  %v2652_v47 = vld [vmem:[%s3141_s13 + $0x28] sm:$0xff]   ;;  %v2653_v0 = vld [vmem:[%s3141_s13 + $0x30] sm:$0xff]   ;;  %p3331_p4 = scmp.eq.s32.totalorder %s3444_s9, 1 }
  0x82   : > { %2462 = vmatpush3.bf16.msra.mxu0 %v2632_v6  ;;  %v2651_v46 = vld [vmem:[%s3141_s13 + $0x20] sm:$0xff]   ;;  %v2654_v1 = vld [vmem:[%s3141_s13 + $0x38] sm:$0xff]   ;;  %s2801_s13 = scalar_lea.vmem %s2017_s22, 512 }
  0x83   : > { %2463 = vmatprep.subr.bf16.mxu0 %v2633_v7  ;;  %v2655_v2 = vld [vmem:[%s3152_s10] ss:$16 sps:$4 sm:$0xff]   ;;  %v2657_v3 = vld [vmem:[%s3152_s10 + $0x4] ss:$16 sps:$4 sm:$0xff]   ;;  %v2660_v4 = vld [vmem:[%s3152_s10 + $0xc] ss:$16 sps:$4 sm:$0xff]   ;;  %p2802_p5 = scmp.ne.s32.totalorder %s2017_s22, %s2801_s13  ;;  %p2809_p11 = scmp.lt.s32.totalorder %s2801_s13, %s2801_s13 }
  0x84   : > { %v2663_v5 = vld [vmem:[%s3152_s10 + $0x24] ss:$16 sps:$4 sm:$0xff]   ;;  %v2661_v6 = vld [vmem:[%s3152_s10 + $0x20] ss:$16 sps:$4 sm:$0xff]  }
  0x85   : > { %v2667_v10 = vld [vmem:[%s3152_s10 + $0x40] ss:$16 sps:$4 sm:$0xff]   ;;  %p2803_p8 = pnand %p2802_p5, %p3331_p4  ;;  %p2810_p13 = por %p2809_p11, %p2808_p10 }
  0x86   : > { %2464 = vmatpush3.bf16.msra.mxu0 %v2633_v7  ;;  %v2669_v7 = vld [vmem:[%s3152_s10 + $0x44] ss:$16 sps:$4 sm:$0xff]  }
  0x87   : > { %2465 = vmatprep.subr.bf16.mxu0 %v2634_v11  ;;  %p2804_p9 = pneg %p2803_p8 }
  0x89   : > { %p2811_p2 = pnand %p2810_p13, %p2804_p9 }
  0x8a   : > { %2466 = vmatpush3.bf16.msra.mxu0 %v2634_v11  ;;  %v2675_v11 = vld [vmem:[%s3152_s10 + $0x64] ss:$16 sps:$4 sm:$0xff]  }
  0x8b   : > { %2467 = vmatprep.subr.bf16.mxu0 %v2635_v12 }
  0x8e   : > { %2468 = vmatpush3.bf16.msra.mxu0 %v2635_v12  ;;  %v2673_v12 = vld [vmem:[%s3152_s10 + $0x60] ss:$16 sps:$4 sm:$0xff]  }
  0x8f   : > { %2469 = vmatprep.subr.bf16.mxu0 %v2636_v13 }
  0x92   : > { %2470 = vmatpush3.bf16.msra.mxu0 %v2636_v13  ;;  %v2681_v13 = vld [vmem:[%s3152_s10 + $0x84] ss:$16 sps:$4 sm:$0xff]  }
  0x93   : > { %2471 = vmatprep.subr.bf16.mxu0 %v2637_v14 }
  0x96   : > { %2472 = vmatpush3.bf16.msra.mxu0 %v2637_v14  ;;  %v2679_v14 = vld [vmem:[%s3152_s10 + $0x80] ss:$16 sps:$4 sm:$0xff]  }
  0x97   : > { %2509 = vmatprep.subr.bf16.mxu0 %v2647_v42 }
  0x99   : > { %2474 = vmatmul.mubr.bf16.vlgmr.msra.gmra.mrb[0].mxu0 %v723_v17  ;;  %v2687_v17 = vld [vmem:[%s3152_s10 + $0xa4] ss:$16 sps:$4 sm:$0xff]  }
  0x9a   : > { %2510 = vmatpush3.bf16.msra.mxu0 %v2647_v42  ;;  %v2702_v42 = vld [vmem:[%s3152_s10 + $0xec] ss:$16 sps:$4 sm:$0xff]  }
  0x9b   : > { %2511 = vmatprep.subr.bf16.mxu0 %v2648_v43 }
  0x9e   : > { %2512 = vmatpush3.bf16.msra.mxu0 %v2648_v43  ;;  %v2697_v43 = vld [vmem:[%s3152_s10 + $0xe0] ss:$16 sps:$4 sm:$0xff]  }
  0x9f   : > { %2513 = vmatprep.subr.bf16.mxu0 %v2649_v44 }
  0xa2   : > { %2514 = vmatpush3.bf16.msra.mxu0 %v2649_v44  ;;  %v2700_v44 = vld [vmem:[%s3152_s10 + $0xe8] ss:$16 sps:$4 sm:$0xff]  }
  0xa3   : > { %2515 = vmatprep.subr.bf16.mxu0 %v2650_v45 }
  0xa6   : > { %2516 = vmatpush3.bf16.msra.mxu0 %v2650_v45  ;;  %v2703_v45 = vld [vmem:[%s3162_s6 + $0x40] sm:$0xff]  }
  0xa7   : > { %2517 = vmatprep.subr.bf16.mxu0 %v2651_v46 }
  0xaa   : > { %2518 = vmatpush3.bf16.msra.mxu0 %v2651_v46  ;;  %v2704_v46 = vld [vmem:[%s3162_s6 + $0xc0] sm:$0xff]  }
  0xab   : > { %2519 = vmatprep.subr.bf16.mxu0 %v2652_v47 }
  0xae   : > { %2520 = vmatpush3.bf16.msra.mxu0 %v2652_v47 }
  0xaf   : > { %2521 = vmatprep.subr.bf16.mxu0 %v2653_v0 }
  0xb2   : > { %2522 = vmatpush3.bf16.msra.mxu0 %v2653_v0  ;;  %v2711_v0 = vld [vmem:[%s3162_s6 + $0x50] sm:$0xff]  }
  0xb3   : > { %2523 = vmatprep.subr.bf16.mxu0 %v2654_v1 }
  0xb6   : > { %2524 = vmatpush3.bf16.msra.mxu0 %v2654_v1  ;;  %v2712_v1 = vld [vmem:[%s3162_s6 + $0xd0] sm:$0xff]  }
  0xb7   : > { %1445 = vmatprep.subr.bf16.mxu0 %v2660_v4  ;;  %v2716_v4 = vld [vmem:[%s3162_s6 + $0xd8] sm:$0xff]  }
  0xfc   : > { %v837_v48 = vpop.permute.xlu0 %836 }
 0x100   : > { %v842_v50 = vpop.permute.xlu0 %841 }
 0x16c   : > { %v2475_v22 = vpop.f32.mrb[0].mxu0 }
 0x16d   : > { %v813_v24 = vpop.f32.mrb[1].mxu0  ;;  %v822_v26 = vadd.f32 %v2475_v22, %v2243_v23 }
 0x16e   : > { %v2476_v25 = vpop.f32.mrb[2].mxu0  ;;  %v814_v29 = vadd.f32 %v2243_v23, %v813_v24 }
 0x16f   : > { %v825_v27 = vadd.f32 %v2476_v25, %v2243_v23  ;;  %v816_v28 = vpop.f32.mrb[3].mxu0 }
 0x170   : > { %v817_v30 = vadd.f32 %v2243_v23, %v816_v28 }
 0x171   : > { %v829_v31 = vpack.c.bf16 %v825_v27, %v822_v26 }
 0x172   : > { %v828_v32 = vpack.c.bf16 %v817_v30, %v814_v29  ;;  %v2658_v29 = vld [vmem:[%s3152_s10 + $0x8] ss:$16 sps:$4 sm:$0xff]   ;;  %v2666_v30 = vld [vmem:[%s3152_s10 + $0x2c] ss:$16 sps:$4 sm:$0xff]  }
 0x174   : > { %2478 = vmatpush3.bf16.msra.mxu1 %v828_v32  ;;  %v2676_v32 = vld [vmem:[%s3152_s10 + $0x68] ss:$16 sps:$4 sm:$0xff]  }
 0x175   : > { %2483 = vmatprep.subr.bf16.mxu1 %v2891_v18 }
 0x177   : > { %2480 = vmatmul.mubr.msk.bf16.vlgmr.msra.gmra.mrb[0].mxu1 %vm849_vm1, %v2638_v33 }
 0x178   : > { %2484 = vmatpush3.bf16.msra.mxu1 %v829_v31  ;;  %2485 = vmatprep.mubr.msk.bf16.mxu1 %vm2892_vm0, %v2891_v18  ;;  %v2685_v18 = vld [vmem:[%s3152_s10 + $0xa0] ss:$16 sps:$4 sm:$0xff]   ;;  %v2678_v31 = vld [vmem:[%s3152_s10 + $0x6c] ss:$16 sps:$4 sm:$0xff]  }
 0x179   : > { %2489 = vmatprep.subr.bf16.mxu1 %v2639_v34 }
 0x17f   : > { %2486 = vmatmul.mubr.msk.bf16.vlgmr.msra.gmra.mrb[4].mxu1 %vm849_vm1, %v2638_v33  ;;  %v2684_v33 = vld [vmem:[%s3152_s10 + $0x8c] ss:$16 sps:$4 sm:$0xff]  }
 0x180   : > { %2490 = vmatpush3.bf16.msra.mxu1 %v2639_v34  ;;  %v2682_v34 = vld [vmem:[%s3152_s10 + $0x88] ss:$16 sps:$4 sm:$0xff]  }
 0x181   : > { %2491 = vmatprep.subr.bf16.mxu1 %v2640_v35 }
 0x184   : > { %2492 = vmatpush3.bf16.msra.mxu1 %v2640_v35  ;;  %v2690_v35 = vld [vmem:[%s3152_s10 + $0xac] ss:$16 sps:$4 sm:$0xff]  }
 0x185   : > { %2493 = vmatprep.subr.bf16.mxu1 %v2641_v36 }
 0x188   : > { %2494 = vmatpush3.bf16.msra.mxu1 %v2641_v36  ;;  %v2688_v36 = vld [vmem:[%s3152_s10 + $0xa8] ss:$16 sps:$4 sm:$0xff]  }
 0x189   : > { %2495 = vmatprep.subr.bf16.mxu1 %v2642_v37 }
 0x18c   : > { %2496 = vmatpush3.bf16.msra.mxu1 %v2642_v37  ;;  %v2693_v37 = vld [vmem:[%s3152_s10 + $0xc4] ss:$16 sps:$4 sm:$0xff]  }
 0x18d   : > { %2497 = vmatprep.subr.bf16.mxu1 %v2643_v38 }
 0x190   : > { %2498 = vmatpush3.bf16.msra.mxu1 %v2643_v38  ;;  %v2696_v38 = vld [vmem:[%s3152_s10 + $0xcc] ss:$16 sps:$4 sm:$0xff]  }
 0x191   : > { %2499 = vmatprep.subr.bf16.mxu1 %v2644_v39 }
 0x194   : > { %2500 = vmatpush3.bf16.msra.mxu1 %v2644_v39  ;;  %v2691_v39 = vld [vmem:[%s3152_s10 + $0xc0] ss:$16 sps:$4 sm:$0xff]  }
 0x195   : > { %2501 = vmatprep.subr.bf16.mxu1 %v2645_v40 }
 0x198   : > { %2502 = vmatpush3.bf16.msra.mxu1 %v2645_v40  ;;  %v2694_v40 = vld [vmem:[%s3152_s10 + $0xc8] ss:$16 sps:$4 sm:$0xff]  }
 0x199   : > { %2503 = vmatprep.subr.bf16.mxu1 %v2646_v41 }
 0x19c   : > { %2504 = vmatpush3.bf16.msra.mxu1 %v2646_v41  ;;  %v2699_v41 = vld [vmem:[%s3152_s10 + $0xe4] ss:$16 sps:$4 sm:$0xff]  }
 0x19d   : > { %1392 = vmatprep.subr.bf16.mxu1 %v2657_v3  ;;  %v2714_v3 = vld [vmem:[%s3162_s6 + $0x90] sm:$0xff]  }
 0x24a   : > { %v887_v49 = vpop.f32.mrb[0].mxu1 }
 0x24b   : > { %v2481_v51 = vpop.f32.mrb[1].mxu1  ;;  %v888_v53 = vadd.f32 %v887_v49, %v837_v48 }
 0x24c   : > { %v890_v52 = vpop.f32.mrb[2].mxu1 }
 0x24d   : > { %v891_v54 = vadd.f32 %v890_v52, %v842_v50  ;;  %v2482_v55 = vpop.f32.mrb[3].mxu1 }
 0x24f   : > { %v951_v56 = vpack.c.bf16 %v891_v54, %v888_v53 }
 0x251   : > { %2505 = vmatprep.mubr.bf16.mxu1 %v951_v56 }
 0x252   : > { %v928_v57 = vpop.f32.mrb[4].mxu1 }
 0x253   : > { %v2487_v58 = vpop.f32.mrb[5].mxu1  ;;  %v929_v60 = vadd.f32 %v928_v57, %v837_v48  ;;  %v2263_v48 = vld [vmem:[%s3441_s30] ss:$0 sm:$0xff] }
 0x254   : > { %v931_v59 = vpop.f32.mrb[6].mxu1  ;;  %v2705_v58 = vld [vmem:[%s3162_s6] sm:$0xff]  }
 0x255   : > { %v932_v61 = vadd.f32 %v931_v59, %v842_v50  ;;  %v2488_v62 = vpop.f32.mrb[7].mxu1  ;;  %v2706_v59 = vld [vmem:[%s3162_s6 + $0x80] sm:$0xff]  }
 0x256   : > { %v2709_v62 = vld [vmem:[%s3162_s6 + $0x8] sm:$0xff]  }
 0x257   : > { %v952_v63 = vpack.c.bf16 %v932_v61, %v929_v60  ;;  %v2707_v60 = vld [vmem:[%s3162_s6 + $0x48] sm:$0xff]  }
 0x258   : > { %v2708_v61 = vld [vmem:[%s3162_s6 + $0xc8] sm:$0xff]  }
 0x259   : > { %2506 = vmatmul.mubr.bf16.vlgmr.msra.gmra.mrb[8].mxu1 %v952_v63  ;;  %v2710_v63 = vld [vmem:[%s3162_s6 + $0x88] sm:$0xff]  }
 0x25a   : > { %1424 = vmatprep.mubr.bf16.mxu1 %v2893_v20  ;;  %1393 = vmatpush1.bf16.msra.mxu1 %v2655_v2  ;;  %v2713_v2 = vld [vmem:[%s3162_s6 + $0x10] sm:$0xff]  }
 0x25b   : > { %1394 = vmatprep.subr.bf16.mxu1 %v2663_v5  ;;  %v2717_v5 = vld [vmem:[%s3162_s6 + $0x18] sm:$0xff]  }
 0x25e   : > { %1395 = vmatpush1.bf16.msra.mxu1 %v2661_v6  ;;  %v2718_v6 = vld [vmem:[%s3162_s6 + $0x98] sm:$0xff]  }
 0x25f   : > { %1396 = vmatprep.subr.bf16.mxu1 %v2669_v7  ;;  %v2719_v7 = vld [vmem:[%s3162_s6 + $0x60] sm:$0xff]  }
 0x262   : > { %1397 = vmatpush1.bf16.msra.mxu1 %v2667_v10  ;;  %v2720_v10 = vld [vmem:[%s3162_s6 + $0xe0] sm:$0xff]  }
 0x263   : > { %1398 = vmatprep.subr.bf16.mxu1 %v2675_v11  ;;  %v2721_v11 = vld [vmem:[%s3162_s6 + $0x20] sm:$0xff]  }
 0x266   : > { %1399 = vmatpush1.bf16.msra.mxu1 %v2673_v12  ;;  %v2722_v12 = vld [vmem:[%s3162_s6 + $0xa0] sm:$0xff]  }
 0x267   : > { %1400 = vmatprep.subr.bf16.mxu1 %v2681_v13  ;;  %v2723_v13 = vld [vmem:[%s3162_s6 + $0x68] sm:$0xff]  }
 0x26a   : > { %1401 = vmatpush1.bf16.msra.mxu1 %v2679_v14  ;;  %v2724_v14 = vld [vmem:[%s3162_s6 + $0xe8] sm:$0xff]  }
 0x26b   : > { %1402 = vmatprep.subr.bf16.mxu1 %v2687_v17  ;;  %v2725_v17 = vld [vmem:[%s3162_s6 + $0x28] sm:$0xff]  }
 0x26e   : > { %1403 = vmatpush1.bf16.msra.mxu1 %v2685_v18  ;;  %v2726_v18 = vld [vmem:[%s3162_s6 + $0xa8] sm:$0xff]  }
 0x26f   : > { %1404 = vmatprep.subr.bf16.mxu1 %v2693_v37 }
 0x272   : > { %1405 = vmatpush1.bf16.msra.mxu1 %v2691_v39 }
 0x273   : > { %1406 = vmatprep.subr.bf16.mxu1 %v2699_v41 }
 0x276   : > { %1407 = vmatpush1.bf16.msra.mxu1 %v2697_v43 }
 0x277   : > { %2391 = vmatprep.subr.bf16.mxu1 %v2703_v45 }
 0x32c   : > { %v2507_v19 = vpop.f32.mrb[8].mxu1 }
 0x32d   : > { %v1035_v21 = vpop.f32.mrb[9].mxu1  ;;  %v3247_v27 = vadd.f32 %v2507_v19, %v3188_v15  ;;  %v2670_v15 = vld [vmem:[%s3152_s10 + $0x48] ss:$16 sps:$4 sm:$0xff]   ;;  %v2727_v19 = vld [vmem:[%s3162_s6 + $0x70] sm:$0xff]  }
 0x32e   : > { %v2508_v22 = vpop.f32.mrb[10].mxu1  ;;  %v3241_v25 = vadd.f32 %v1035_v21, %v3178_v8  ;;  %v2664_v8 = vld [vmem:[%s3152_s10 + $0x28] ss:$16 sps:$4 sm:$0xff]   ;;  %v2728_v21 = vld [vmem:[%s3162_s6 + $0xf0] sm:$0xff]  }
 0x32f   : > { %v3238_v23 = vadd.f32 %v2508_v22, %v3190_v16  ;;  %v1038_v24 = vpop.f32.mrb[11].mxu1  ;;  %v2729_v22 = vld [vmem:[%s3162_s6 + $0x30] sm:$0xff]  }
 0x330   : > { %v3244_v26 = vadd.f32 %v1038_v24, %v3180_v9  ;;  %v2672_v9 = vld [vmem:[%s3152_s10 + $0x4c] ss:$16 sps:$4 sm:$0xff]   ;;  %v2730_v24 = vld [vmem:[%s3162_s6 + $0xb0] sm:$0xff]  }
 0x331   : > { %v1071_v16 = vpack.c.bf16 %v3238_v23, %v3247_v27 }
 0x332   : > { %v1070_v28 = vpack.c.bf16 %v3244_v26, %v3241_v25 }
 0x334   : > { %2525 = vmatprep.mubr.bf16.mxu0 %v1070_v28  ;;  %v2731_v28 = vld [vmem:[%s3162_s6 + $0x78] sm:$0xff]  }
 0x335   : > { %2526 = vmatmul.mubr.bf16.vlgmr.msra.gmra.mrb[4].mxu0 %v1071_v16  ;;  %v2733_v16 = vld [vmem:[%s3162_s6 + $0x38] sm:$0xff]  }
 0x336   : > { %1446 = vmatpush1.bf16.msra.mxu0 %v2658_v29  ;;  %1477 = vmatprep.mubr.bf16.mxu0 %v2893_v20  ;;  %v2732_v29 = vld [vmem:[%s3162_s6 + $0xf8] sm:$0xff]  }
 0x337   : > { %1447 = vmatprep.subr.bf16.mxu0 %v2666_v30  ;;  %v2734_v30 = vld [vmem:[%s3162_s6 + $0xb8] sm:$0xff]  }
 0x33a   : > { %1448 = vmatpush1.bf16.msra.mxu0 %v2664_v8  ;;  %v2735_v8 = vld [vmem:[%s3171_s29] sm:$0xff]  }
 0x33b   : > { %1449 = vmatprep.subr.bf16.mxu0 %v2672_v9  ;;  %v1212_v9 = vlaneseq }
 0x33e   : > { %1450 = vmatpush1.bf16.msra.mxu0 %v2670_v15  ;;  %v1213_v15 = vshrl.u32 %v1212_v9, 7 }
 0x33f   : > { %1451 = vmatprep.subr.bf16.mxu0 %v2678_v31 }
 0x340   : > { %v1214_v31 = vsub.s32 0, %v1213_v15 }
 0x342   : > { %1452 = vmatpush1.bf16.msra.mxu0 %v2676_v32  ;;  %v1222_v32 = vsub.s32 2, %v1213_v15 }
 0x343   : > { %1453 = vmatprep.subr.bf16.mxu0 %v2684_v33  ;;  %v1210_v33 = vld [vmem:[%s3157_s3] sm:$0xf] }
 0x344   : > { %v1223_v37 = vrot.slane %v1210_v33, %v1222_v32 }
 0x346   : > { %1454 = vmatpush1.bf16.msra.mxu0 %v2682_v34  ;;  %v1218_v34 = vsub.s32 1, %v1213_v15 }
 0x347   : > { %1455 = vmatprep.subr.bf16.mxu0 %v2690_v35  ;;  %v1226_v35 = vsub.s32 3, %v1213_v15  ;;  %v2737_v15 = vld [vmem:[%s3171_s29 + $0x10] sm:$0xff]  }
 0x349   : > { %v1227_v39 = vrot.slane %v1210_v33, %v1226_v35 }
 0x34a   : > { %1456 = vmatpush1.bf16.msra.mxu0 %v2688_v36  ;;  %v1215_v36 = vrot.slane %v1210_v33, %v1214_v31 }
 0x34b   : > { %1457 = vmatprep.subr.bf16.mxu0 %v2696_v38  ;;  %v1219_v38 = vrot.slane %v1210_v33, %v1218_v34 }
 0x34e   : > { %1458 = vmatpush1.bf16.msra.mxu0 %v2694_v40 }
 0x34f   : > { %1459 = vmatprep.subr.bf16.mxu0 %v2702_v42 }
 0x352   : > { %1460 = vmatpush1.bf16.msra.mxu0 %v2700_v44 }
 0x353   : > { %2419 = vmatprep.subr.bf16.mxu0 %v2704_v46 }
 0x408   : > { %v2527_v47 = vpop.f32.mrb[4].mxu0 }
 0x409   : > { %v1161_v49 = vpop.f32.mrb[5].mxu0  ;;  %v1170_v51 = vadd.f32 %v2527_v47, %v2263_v48 }
 0x40a   : > { %v2528_v50 = vpop.f32.mrb[6].mxu0  ;;  %v1162_v54 = vadd.f32 %v2263_v48, %v1161_v49 }
 0x40b   : > { %v1173_v52 = vadd.f32 %v2528_v50, %v2263_v48  ;;  %v1164_v53 = vpop.f32.mrb[7].mxu0 }
 0x40c   : > { %v1165_v55 = vadd.f32 %v2263_v48, %v1164_v53 }
 0x40d   : > { %v1209_v56 = vpack.c.bf16 %v1173_v52, %v1170_v51 }
 0x40e   : > { %v1208_v57 = vpack.c.bf16 %v1165_v55, %v1162_v54 }
 0x410   : > { %1425 = vmatmul.mubr.bf16.vlgmr.msra.gmra.mrb[12].mxu1 %v1208_v57  ;;  %1478 = vmatmul.mubr.bf16.vlgmr.msra.gmra.mrb[8].mxu0 %v1208_v57 }
 0x411   : > { %1434 = vmatprep.mubr.bf16.mxu1 %v2893_v20  ;;  %1487 = vmatprep.mubr.bf16.mxu0 %v2893_v20  ;;  %v2715_v20 = vld [vmem:[%s3162_s6 + $0x58] sm:$0xff]  }
 0x412   : > { %2392 = vmatpush3.bf16.msra.mxu1 %v2705_v58  ;;  %2420 = vmatpush3.bf16.msra.mxu0 %v2706_v59 }
 0x413   : > { %2393 = vmatprep.subr.bf16.mxu1 %v2707_v60  ;;  %2421 = vmatprep.subr.bf16.mxu0 %v2708_v61 }
 0x416   : > { %2394 = vmatpush3.bf16.msra.mxu1 %v2709_v62  ;;  %2422 = vmatpush3.bf16.msra.mxu0 %v2710_v63 }
 0x417   : > { %2395 = vmatprep.subr.bf16.mxu1 %v2711_v0  ;;  %2423 = vmatprep.subr.bf16.mxu0 %v2712_v1 }
 0x418   : > { %1435 = vmatmul.mubr.bf16.gmra.mrb[16].mxu1 %v1209_v56  ;;  %1488 = vmatmul.mubr.bf16.gmra.mrb[12].mxu0 %v1209_v56 }
 0x41a   : > { %2396 = vmatpush3.bf16.msra.mxu1 %v2713_v2  ;;  %2424 = vmatpush3.bf16.msra.mxu0 %v2714_v3 }
 0x41b   : > { %2397 = vmatprep.subr.bf16.mxu1 %v2715_v20  ;;  %2425 = vmatprep.subr.bf16.mxu0 %v2716_v4 }
 0x41e   : > { %2398 = vmatpush3.bf16.msra.mxu1 %v2717_v5  ;;  %2426 = vmatpush3.bf16.msra.mxu0 %v2718_v6 }
 0x41f   : > { %2399 = vmatprep.subr.bf16.mxu1 %v2719_v7  ;;  %2427 = vmatprep.subr.bf16.mxu0 %v2720_v10 }
 0x422   : > { %2400 = vmatpush3.bf16.msra.mxu1 %v2721_v11  ;;  %2428 = vmatpush3.bf16.msra.mxu0 %v2722_v12  ;;  %v2736_v11 = vld [vmem:[%s3171_s29 + $0x8] sm:$0xff]  }
 0x423   : > { %2401 = vmatprep.subr.bf16.mxu1 %v2723_v13  ;;  %2429 = vmatprep.subr.bf16.mxu0 %v2724_v14 }
 0x426   : > { %2402 = vmatpush3.bf16.msra.mxu1 %v2725_v17  ;;  %2430 = vmatpush3.bf16.msra.mxu0 %v2726_v18 }
 0x427   : > { %2403 = vmatprep.subr.bf16.mxu1 %v2727_v19  ;;  %2431 = vmatprep.subr.bf16.mxu0 %v2728_v21 }
 0x42a   : > { %2404 = vmatpush3.bf16.msra.mxu1 %v2729_v22  ;;  %2432 = vmatpush3.bf16.msra.mxu0 %v2730_v24 }
 0x42b   : > { %2405 = vmatprep.subr.bf16.mxu1 %v2731_v28  ;;  %2433 = vmatprep.subr.bf16.mxu0 %v2732_v29 }
 0x42e   : > { %2406 = vmatpush3.bf16.msra.mxu1 %v2733_v16  ;;  %2434 = vmatpush3.bf16.msra.mxu0 %v2734_v30 }
 0x42f   : > { %2529 = vmatprep.subr.bf16.mxu1 %v2735_v8 }
 0x4e3   : > { %v1426_v40 = vpop.f32.mrb[12].mxu1  ;;  %v1479_v41 = vpop.f32.mrb[8].mxu0 }
 0x4e4   : > { %v1427_v42 = vadd.f32 %v1426_v40, %v1215_v36  ;;  %v1480_v43 = vadd.f32 %v1479_v41, %v1223_v37  ;;  %v1428_v44 = vpop.f32.mrb[13].mxu1  ;;  %v1481_v45 = vpop.f32.mrb[9].mxu0  ;;  %v2741_v41 = vld [vmem:[%s3171_s29 + $0x30] sm:$0xff]  }
 0x4e5   : > { %v1429_v46 = vadd.f32 %v1428_v44, %v1219_v38  ;;  %v1482_v47 = vadd.f32 %v1481_v45, %v1227_v39  ;;  %v1430_v48 = vpop.f32.mrb[14].mxu1  ;;  %v1483_v49 = vpop.f32.mrb[10].mxu0  ;;  %v2304_v45 = vld [vmem:[%s682_s16] ss:$0 sm:$0xff] }
 0x4e6   : > { %v1431_v50 = vadd.f32 %v1430_v48, %v1215_v36  ;;  %v1484_v51 = vadd.f32 %v1483_v49, %v1223_v37  ;;  %v1432_v52 = vpop.f32.mrb[15].mxu1  ;;  %v1485_v53 = vpop.f32.mrb[11].mxu0  ;;  %v1498_v56 = vmax.f32 %v1427_v42, 0.0  ;;  %v1500_v57 = vmax.f32 %v1480_v43, 0.0  ;;  %v2742_v42 = vld [vmem:[%s3171_s29 + $0x38] sm:$0xff]  }
 0x4e7   : > { %v1433_v54 = vadd.f32 %v1432_v52, %v1219_v38  ;;  %v1486_v55 = vadd.f32 %v1485_v53, %v1227_v39  ;;  %v1499_v60 = vmax.f32 %v1429_v46, 0.0  ;;  %v1501_v61 = vmax.f32 %v1482_v47, 0.0 }
 0x4e8   : > { %v1502_v58 = vmax.f32 %v1431_v50, 0.0  ;;  %v1504_v59 = vmax.f32 %v1484_v51, 0.0 }
 0x4e9   : > { %v1503_v62 = vmax.f32 %v1433_v54, 0.0  ;;  %v1505_v63 = vmax.f32 %v1486_v55, 0.0 }
 0x4ea   : > { %v1578_v0 = vpack.c.bf16 %v1502_v58, %v1498_v56  ;;  %v1580_v1 = vpack.c.bf16 %v1504_v59, %v1500_v57 }
 0x4eb   : > { %v1579_v2 = vpack.c.bf16 %v1503_v62, %v1499_v60  ;;  %v1581_v3 = vpack.c.bf16 %v1505_v63, %v1501_v61  ;;  %v1436_v20 = vpop.f32.mrb[16].mxu1  ;;  %v1489_v4 = vpop.f32.mrb[12].mxu0 }
 0x4ec   : > { %v1437_v5 = vadd.f32 %v1436_v20, %v1215_v36  ;;  %v1490_v6 = vadd.f32 %v1489_v4, %v1223_v37  ;;  %v1438_v7 = vpop.f32.mrb[17].mxu1  ;;  %v1491_v10 = vpop.f32.mrb[13].mxu0 }
 0x4ed   : > { %v1439_v12 = vadd.f32 %v1438_v7, %v1219_v38  ;;  %v1492_v13 = vadd.f32 %v1491_v10, %v1227_v39  ;;  %v1440_v14 = vpop.f32.mrb[18].mxu1  ;;  %v1493_v17 = vpop.f32.mrb[14].mxu0  ;;  %1817 = vmatprep.mubr.bf16.mxu1 %v1579_v2  ;;  %1866 = vmatprep.mubr.bf16.mxu0 %v1581_v3 }
 0x4ee   : > { %v1441_v18 = vadd.f32 %v1440_v14, %v1215_v36  ;;  %v1494_v19 = vadd.f32 %v1493_v17, %v1223_v37  ;;  %v1442_v21 = vpop.f32.mrb[19].mxu1  ;;  %v1495_v22 = vpop.f32.mrb[15].mxu0  ;;  %1818 = vmatmul.mubr.bf16.vlgmr.msra.gmra.mrb[20].mxu1 %v1578_v0  ;;  %1867 = vmatmul.mubr.bf16.vlgmr.msra.gmra.mrb[16].mxu0 %v1580_v1  ;;  %v1506_v29 = vmax.f32 %v1437_v5, 0.0  ;;  %v1508_v16 = vmax.f32 %v1490_v6, 0.0 }
 0x4ef   : > { %v1443_v24 = vadd.f32 %v1442_v21, %v1219_v38  ;;  %v1496_v28 = vadd.f32 %v1495_v22, %v1227_v39  ;;  %2530 = vmatpush3.bf16.msra.mxu1 %v2735_v8  ;;  %v1507_v31 = vmax.f32 %v1439_v12, 0.0  ;;  %v1509_v32 = vmax.f32 %v1492_v13, 0.0  ;;  %v2738_v8 = vld [vmem:[%s3171_s29 + $0x18] sm:$0xff]   ;;  %v2739_v38 = vld [vmem:[%s3171_s29 + $0x20] sm:$0xff]   ;;  %v2740_v39 = vld [vmem:[%s3171_s29 + $0x28] sm:$0xff]  }
 0x4f0   : > { %v1510_v30 = vmax.f32 %v1441_v18, 0.0  ;;  %v1512_v9 = vmax.f32 %v1494_v19, 0.0  ;;  %2531 = vmatprep.subr.bf16.mxu1 %v2736_v11 }
 0x4f1   : > { %v1511_v33 = vmax.f32 %v1443_v24, 0.0  ;;  %v1513_v34 = vmax.f32 %v1496_v28, 0.0 }
 0x4f2   : > { %v1582_v35 = vpack.c.bf16 %v1510_v30, %v1506_v29  ;;  %v1584_v36 = vpack.c.bf16 %v1512_v9, %v1508_v16 }
 0x4f3   : > { %v1583_v37 = vpack.c.bf16 %v1511_v33, %v1507_v31  ;;  %v1585_v40 = vpack.c.bf16 %v1513_v34, %v1509_v32  ;;  %2532 = vmatpush3.bf16.msra.mxu1 %v2736_v11 }
 0x4f4   : > { %2533 = vmatprep.subr.bf16.mxu1 %v2737_v15 }
 0x4f5   : > { %1825 = vmatprep.mubr.bf16.mxu1 %v1583_v37  ;;  %1874 = vmatprep.mubr.bf16.mxu0 %v1585_v40 }
 0x4f6   : > { %1826 = vmatmul.mubr.bf16.gmra.mrb[24].mxu1 %v1582_v35  ;;  %1875 = vmatmul.mubr.bf16.gmra.mrb[20].mxu0 %v1584_v36 }
 0x4f7   : > { %2534 = vmatpush3.bf16.msra.mxu1 %v2737_v15 }
 0x4f8   : > { %2535 = vmatprep.subr.bf16.mxu1 %v2738_v8 }
 0x4fb   : > { %2536 = vmatpush3.bf16.msra.mxu1 %v2738_v8 }
 0x4fc   : > { %2537 = vmatprep.subr.bf16.mxu1 %v2739_v38 }
 0x4ff   : > { %2538 = vmatpush3.bf16.msra.mxu1 %v2739_v38 }
 0x500   : > { %2539 = vmatprep.subr.bf16.mxu1 %v2740_v39 }
 0x503   : > { %2540 = vmatpush3.bf16.msra.mxu1 %v2740_v39 }
 0x504   : > { %2541 = vmatprep.subr.bf16.mxu1 %v2741_v41 }
 0x507   : > { %2542 = vmatpush3.bf16.msra.mxu1 %v2741_v41 }
 0x508   : > { %2543 = vmatprep.subr.bf16.mxu1 %v2742_v42 }
 0x50b   : > { %2544 = vmatpush3.bf16.msra.mxu1 %v2742_v42 }
 0x5c1   : > { %v2407_v43 = vpop.f32.mrb[20].mxu1  ;;  %v2435_v44 = vpop.f32.mrb[16].mxu0 }
 0x5c2   : > { %v2408_v46 = vpop.f32.mrb[21].mxu1  ;;  %v2436_v47 = vpop.f32.mrb[17].mxu0 }
 0x5c3   : > { %v2409_v48 = vadd.f32 %v2408_v46, %v2407_v43  ;;  %v2437_v49 = vadd.f32 %v2436_v47, %v2435_v44  ;;  %v2410_v50 = vpop.f32.mrb[22].mxu1  ;;  %v2438_v51 = vpop.f32.mrb[18].mxu0 }
 0x5c4   : > { %v2411_v52 = vpop.f32.mrb[23].mxu1  ;;  %v2439_v53 = vpop.f32.mrb[19].mxu0 }
 0x5c5   : > { %v1820_v54 = vadd.f32 %v2409_v48, %v2304_v45  ;;  %v2412_v55 = vadd.f32 %v2411_v52, %v2410_v50  ;;  %v2440_v56 = vadd.f32 %v2439_v53, %v2438_v51 }
 0x5c7   : > { %v1869_v57 = vadd.f32 %v2437_v49, %v1820_v54  ;;  %v1823_v58 = vadd.f32 %v2412_v55, %v2304_v45 }
 0x5c9   : > { %v1872_v59 = vadd.f32 %v2440_v56, %v1823_v58  ;;  %v2413_v60 = vpop.f32.mrb[24].mxu1  ;;  %v2441_v61 = vpop.f32.mrb[20].mxu0 }
 0x5ca   : > { %v2414_v62 = vpop.f32.mrb[25].mxu1  ;;  %v2442_v63 = vpop.f32.mrb[21].mxu0 }
 0x5cb   : > { %v2415_v0 = vadd.f32 %v2414_v62, %v2413_v60  ;;  %v2443_v1 = vadd.f32 %v2442_v63, %v2441_v61  ;;  %v2416_v2 = vpop.f32.mrb[26].mxu1  ;;  %v2444_v3 = vpop.f32.mrb[22].mxu0  ;;  %v1899_v20 = vpack.c.bf16 %v1872_v59, %v1869_v57 }
 0x5cc   : > { %v2417_v4 = vpop.f32.mrb[27].mxu1  ;;  %v2445_v5 = vpop.f32.mrb[23].mxu0 }
 0x5cd   : > { %v1828_v6 = vadd.f32 %v2415_v0, %v2304_v45  ;;  %v2418_v7 = vadd.f32 %v2417_v4, %v2416_v2  ;;  %v2446_v10 = vadd.f32 %v2445_v5, %v2444_v3  ;;  %2545 = vmatprep.mubr.bf16.mxu1 %v1899_v20 }
 0x5cf   : > { %v1877_v11 = vadd.f32 %v2443_v1, %v1828_v6  ;;  %v1831_v12 = vadd.f32 %v2418_v7, %v2304_v45 }
 0x5d1   : > { %v1880_v13 = vadd.f32 %v2446_v10, %v1831_v12 }
 0x5d3   : > { %v1900_v14 = vpack.c.bf16 %v1880_v13, %v1877_v11 }
 0x5d5   : > { %2546 = vmatmul.mubr.bf16.vlgmr.msra.gmra.mrb[28].mxu1 %v1900_v14 }
 0x6a8   : > { %v2547_v17 = vpop.f32.mrb[28].mxu1 }
 0x6a9   : > { %v2000_v18 = vadd.f32 %v2547_v17, %v3247_v27  ;;  %v1983_v19 = vpop.f32.mrb[29].mxu1 }
 0x6aa   : > { %v1998_v21 = vadd.f32 %v1983_v19, %v3241_v25  ;;  %v2548_v22 = vpop.f32.mrb[30].mxu1 }
 0x6ab   : > { %2004 = vst [vmem:[#allocation7 + $0x10] sm:$0xff] %v2000_v18  ;;  %v2001_v24 = vadd.f32 %v2548_v22, %v3238_v23  ;;  %v1986_v28 = vpop.f32.mrb[31].mxu1 }
 0x6ac   : > { %2002 = vst [vmem:[#allocation7] sm:$0xff] %v1998_v21  ;;  %v1999_v29 = vadd.f32 %v1986_v28, %v3244_v26 }
 0x6ad   : > { %2005 = vst [vmem:[#allocation7 + $0x18] sm:$0xff] %v2001_v24 }
 0x6ae   : > { %2003 = vst [vmem:[#allocation7 + $0x8] sm:$0xff] %v1999_v29 }
 0x6af   : > { %2814 = shalt.err (!%p2811_p2)
}
 0x6b0   : > { %s3446_s10 = sld [smem:[#allocation27_spill]] }
 0x6b6   : > { %s2815_s24 = scalar_lea.hbm %s3446_s10, 512 }
 0x6b7   : > { %p2816_p3 = scmp.ne.s32.totalorder %s3446_s10, %s2815_s24  ;;  %p2821_p6 = scmp.lt.u32.totalorder %s2815_s24, %s3446_s10 }
 0x6b9   : > { %p2817_p12 = pnand %p2816_p3, %p3331_p4 }
 0x6bb   : > { %p2818_p0 = pneg %p2817_p12 }
 0x6bd   : > { %p2823_p7 = pnand %p2821_p6, %p2818_p0 }
 0x6bf   : > { %2826 = shalt.err (!%p2823_p7)
}
 0x6c0   : > { %s2895_s19 = smov 128   ;;  %s2896_s23 = smov 8  }
 0x6c1   : > { %2556 = dma.vmem_to_hbm [thread:$0]  (%p3331_p4), %s2017_s22, 512, %s3446_s10, [#allocation4], %s2895_s19, %s2895_s19, %s2896_s23  }
 0x6c2   : > { %2860 = dma.done.wait (%p3331_p4), [#allocation4], 512  }
 0x6c3   : > { %2862 = vsyncadd (%p3331_p4), [#allocation4], 4294966784 }
 0x6c4 PF: > { %s3447_s5 = sld [smem:[#allocation14_spill]]  ;;  %s3448_s25 = sld [smem:[#allocation11_spill]] }
 0x6c5   : > { %s3449_s26 = sld [smem:[#allocation12_spill]]  ;;  %s3450_s27 = sld [smem:[#allocation16_spill]] }
 0x6c6   : > { %s3451_s28 = sld [smem:[#allocation13_spill]]  ;;  %s3452_s29 = sld [smem:[#allocation15_spill]] }
 0x6ca   : > { %s28_s30 = sadd.s32 1, %s3447_s5  }
 0x6cb   : > { %p25_p1 = scmp.ge.s32.totalorder %s28_s30, 4  }
 0x6cd   :  { %27 = sbr.rel (!%p25_p1) target bundleno = 18 (0x12), region = 153 }
 0x6d4   :  { %2032 = vsyncpa [#allocation3], 1 }
 0x6d5   :  { %2034 = vsyncpa [#allocation3 + $0x1], 1 }
 0x6d6   :  { %2035 = vsyncpa [#allocation6], 1 }
 0x6d7   :  { %2037 = vsyncpa [#allocation6 + $0x1], 1 }
 0x6d8   :  { %2038 = vsyncpa [#allocation4], 1 }
 0x6d9   :  { %2040 = vsyncpa [#allocation4 + $0x1], 1 }

</bundles_post_ra>
